<compile_context>
chip_gen: v7x
topology: tpu7x:2x2x1
jax: 0.10.0
libtpu: 0.0.40
codegen_flags: <defaults>
</compile_context>

<pallas_src>
import jax
import jax.numpy as jnp
import numpy as np
from jax.experimental import pallas as pl
from jax.experimental.pallas import tpu as pltpu


# ----------------------------------------------------------------------------
# Pallas kernel: batched contraction over the (user‖item) embedding axis.
#   logits[b, l] = sum_d emb[b, l, d] * ui[b, 0, d]
#                = <E_user[t_bl], user_b> + <E_item[t_bl], item_b>
# ----------------------------------------------------------------------------
def _logits_kernel(emb_ref, ui_ref, out_ref):
    emb = emb_ref[...]                     # (TB, Lt, 2D)  f32
    ui = ui_ref[...]                       # (TB, 1, 2D)   f32
    # VPU multiply (broadcast over Lt) + XLU lane reduce over 2D.
    out_ref[...] = jnp.sum(emb * ui, axis=-1)      # (TB, Lt)  f32


def _pick_tb(B: int, Lt: int, D2: int,
             block_budget_bytes: int = 2 * 1024 * 1024) -> int:
    """Rows per grid block: must be == B (full batch) or a multiple of 8."""
    emb_row_bytes = 4 * Lt * D2
    tb = block_budget_bytes // max(emb_row_bytes, 1)
    tb = min(1024, max(8, (tb // 8) * 8))
    return B if B <= tb else tb


def attr_network_logits(emb: jax.Array, ui: jax.Array) -> jax.Array:
    """emb: (B, Lt, 2D) f32, ui: (B, 1, 2D) f32  ->  logits (B, Lt) f32."""
    B, Lt, D2 = emb.shape
    TB = _pick_tb(B, Lt, D2)
    nblk = pl.cdiv(B, TB)

    return pl.pallas_call(
        _logits_kernel,
        out_shape=jax.ShapeDtypeStruct((B, Lt), jnp.float32),
        grid_spec=pltpu.PrefetchScalarGridSpec(
            num_scalar_prefetch=0,
            grid=(nblk,),
            in_specs=[
                pl.BlockSpec((TB, Lt, D2), lambda i: (i, 0, 0)),
                pl.BlockSpec((TB, 1, D2), lambda i: (i, 0, 0)),
            ],
            out_specs=pl.BlockSpec((TB, Lt), lambda i: (i, 0)),
        ),
        compiler_params=pltpu.CompilerParams(
            dimension_semantics=("parallel",)),
    )(emb, ui)


# ----------------------------------------------------------------------------
# Forward wrapper (JAX glue: gathers, mask / new_targets from lengths only).
# ----------------------------------------------------------------------------
@jax.jit
def attr_network_forward(params, item_ids, user_ids,
                         pos_targets, pos_lens, neg_targets, neg_lens):
    # Dropout = eval-mode identity.
    user_embed = params["user_emb"][user_ids].astype(jnp.float32)     # (B, D)
    item_embed = params["item_emb"][item_ids].astype(jnp.float32)     # (B, D)
    ui = jnp.concatenate([user_embed, item_embed], axis=-1)[:, None, :]  # (B,1,2D)

    # One fused gather from the concatenated user‖item attr output table.
    attr_tab = jnp.concatenate(
        [params["out_attr_user"], params["out_attr_item"]], axis=-1)  # (V, 2D)
    targets = jnp.concatenate([pos_targets, neg_targets], axis=1)     # (B, Lt)
    emb = attr_tab[targets].astype(jnp.float32)                       # (B, Lt, 2D)

    # Hot path: Pallas kernel.
    logits = attr_network_logits(emb, ui)                             # (B, Lt)

    # mask / new_targets are pure functions of the lengths (cheap, in JAX).
    Lp = pos_targets.shape[1]
    Ln = neg_targets.shape[1]
    pos_mask = jnp.arange(Lp, dtype=jnp.int32)[None, :] < pos_lens[:, None]
    neg_mask = jnp.arange(Ln, dtype=jnp.int32)[None, :] < neg_lens[:, None]
    mask = jnp.concatenate([pos_mask, neg_mask], axis=-1)             # bool
    new_targets = jnp.concatenate(
        [jnp.ones_like(pos_targets), jnp.zeros_like(neg_targets)], axis=1) * mask

    return logits, mask, new_targets


# ----------------------------------------------------------------------------
# Pure-JAX reference (transcription of the PyTorch forward, eval-mode dropout)
# ----------------------------------------------------------------------------
def _reference_forward(params, item_ids, user_ids,
                       pos_targets, pos_lens, neg_targets, neg_lens):
    user_embed = params["user_emb"][user_ids]
    item_embed = params["item_emb"][item_ids]

    def logits_of(tgts):
        eu = params["out_attr_user"][tgts]
        ei = params["out_attr_item"][tgts]
        lu = jnp.einsum("bld,bd->bl", eu, user_embed)
        li = jnp.einsum("bld,bd->bl", ei, item_embed)
        return lu + li

    def mask_of(lens, width):
        return jnp.arange(width)[None, :] < lens[:, None]

    pos_logits = logits_of(pos_targets)
    neg_logits = logits_of(neg_targets)
    pos_mask = mask_of(pos_lens, pos_targets.shape[1])
    neg_mask = mask_of(neg_lens, neg_targets.shape[1])
    logits = jnp.concatenate([pos_logits, neg_logits], axis=-1)
    mask = jnp.concatenate([pos_mask, neg_mask], axis=-1)
    new_targets = jnp.concatenate(
        [jnp.ones_like(pos_targets), jnp.zeros_like(neg_targets)], axis=1) * mask
    return logits, mask, new_targets


if __name__ == "__main__":
    key = jax.random.PRNGKey(0)

    # Small, module-consistent sizes (attr/user/item emb sizes must match for
    # the forward's contractions to typecheck, as in the original module).
    VOCAB, USERS, ITEMS, D = 50, 10, 12, 32
    B, Lp, Ln = 2, 8, 8

    ks = jax.random.split(key, 10)
    initrange = 0.1
    params = {
        "out_attr_user": jax.random.uniform(ks[0], (VOCAB, D), jnp.float32,
                                            -initrange, initrange),
        "out_attr_item": jax.random.uniform(ks[1], (VOCAB, D), jnp.float32,
                                            -initrange, initrange),
        "user_emb": jax.random.uniform(ks[2], (USERS, D), jnp.float32,
                                       -initrange, initrange),
        "item_emb": jax.random.uniform(ks[3], (ITEMS, D), jnp.float32,
                                       -initrange, initrange),
    }

    user_ids = jax.random.randint(ks[4], (B,), 0, USERS, jnp.int32)
    item_ids = jax.random.randint(ks[5], (B,), 0, ITEMS, jnp.int32)
    pos_targets = jax.random.randint(ks[6], (B, Lp), 0, VOCAB, jnp.int32)
    neg_targets = jax.random.randint(ks[7], (B, Ln), 0, VOCAB, jnp.int32)
    # max length equals padded width, matching torch's f_generate_mask max_len.
    pos_lens = jnp.array([Lp, 5], jnp.int32)
    neg_lens = jnp.array([Ln, 3], jnp.int32)

    logits, mask, new_targets = attr_network_forward(
        params, item_ids, user_ids, pos_targets, pos_lens, neg_targets, neg_lens)
    jax.block_until_ready((logits, mask, new_targets))

    r_logits, r_mask, r_tgts = _reference_forward(
        params, item_ids, user_ids, pos_targets, pos_lens, neg_targets, neg_lens)

    np.testing.assert_allclose(np.asarray(logits), np.asarray(r_logits),
                               rtol=1e-5, atol=1e-5)
    np.testing.assert_array_equal(np.asarray(mask), np.asarray(r_mask))
    np.testing.assert_array_equal(np.asarray(new_targets), np.asarray(r_tgts))

    print("KERNEL_OK")
</pallas_src>

<mosaic_0001>
module attributes {stable_mosaic.version = 11 : i64} {
  func.func @_logits_kernel(%arg0: i32, %arg1: memref<2x16x64xf32, #tpu.memory_space<vmem>>, %arg2: memref<2x1x64xf32, #tpu.memory_space<vmem>>, %arg3: memref<2x16xf32, #tpu.memory_space<vmem>>) attributes {dimension_semantics = [#tpu.dimension_semantics<parallel>], iteration_bounds = array<i64: 1>, scalar_prefetch = 0 : i64, scratch_operands = 0 : i64, tpu.core_type = #tpu.core_type<tc>, window_params = [{transform_indices = @transform_0, window_bounds = array<i64: 2, 16, 64>}, {transform_indices = @transform_1, window_bounds = array<i64: 2, 1, 64>}, {transform_indices = @transform_2, window_bounds = array<i64: 2, 16>}]} {
    %c0 = arith.constant 0 : index
    %c0_0 = arith.constant 0 : index
    %c0_1 = arith.constant 0 : index
    %0 = vector.load %arg1[%c0, %c0_0, %c0_1] : memref<2x16x64xf32, #tpu.memory_space<vmem>>, vector<2x16x64xf32>
    %c0_2 = arith.constant 0 : index
    %c0_3 = arith.constant 0 : index
    %c0_4 = arith.constant 0 : index
    %1 = vector.load %arg2[%c0_2, %c0_3, %c0_4] : memref<2x1x64xf32, #tpu.memory_space<vmem>>, vector<2x1x64xf32>
    %2 = vector.broadcast %1 : vector<2x1x64xf32> to vector<2x16x64xf32>
    %3 = arith.mulf %0, %2 : vector<2x16x64xf32>
    %cst = arith.constant dense<0.000000e+00> : vector<2x16xf32>
    %4 = vector.multi_reduction <add>, %3, %cst [2] : vector<2x16x64xf32> to vector<2x16xf32>
    %c0_5 = arith.constant 0 : index
    %c0_6 = arith.constant 0 : index
    %5 = vector.load %arg3[%c0_5, %c0_6] : memref<2x16xf32, #tpu.memory_space<vmem>>, vector<2x16xf32>
    tpu.vector_store %arg3[%c0_5, %c0_6], %4 {strides = array<i32>} : memref<2x16xf32, #tpu.memory_space<vmem>>, vector<2x16xf32>,
    return
  }
  func.func @transform_0(%arg0: i32) -> (i32, i32, i32) {
    %c0_i32 = arith.constant 0 : i32
    %c0_i32_0 = arith.constant 0 : i32
    %c0_i32_1 = arith.constant 0 : i32
    return %arg0, %c0_i32, %c0_i32_0 : i32, i32, i32
  }
  func.func @transform_1(%arg0: i32) -> (i32, i32, i32) {
    %c0_i32 = arith.constant 0 : i32
    %c0_i32_0 = arith.constant 0 : i32
    %c0_i32_1 = arith.constant 0 : i32
    return %arg0, %c0_i32, %c0_i32_0 : i32, i32, i32
  }
  func.func @transform_2(%arg0: i32) -> (i32, i32) {
    %c0_i32 = arith.constant 0 : i32
    %c0_i32_0 = arith.constant 0 : i32
    return %arg0, %c0_i32 : i32, i32
  }
}

</mosaic_0001>

<bundles_post_ra>
// kernel: attr_network_forward.1
= control target key start
LH: loop header
LB: loop body
LE: loop exit
PB: predicated region body
PF: predicated region fallthrough
CT: control target
= control target key end

     0   :  { %vm34_vm0 = vcmask 523264   ;;  %s165_s0 = inlined_call_operand.vmem [shape: f32[2,16,64], index: 0, kind: input, shape index: {}]   ;;  %s166_s1 = inlined_call_operand.vmem [shape: f32[2,1,64], index: 1, kind: input, shape index: {}]   ;;  %s167_s2 = inlined_call_operand.hbm [shape: f32[2,16], index: 2, kind: output, shape index: {}]  }
   0x1   :  { %v14_v0 = vld [vmem:[%s165_s0 + $0x10] sm:$0xff]  ;;  %v93_v1 = vld [vmem:[%s166_s1 + $0x1] ss:$0 sm:$0xff]  ;;  %v92_v4 = vld [vmem:[%s166_s1] ss:$0 sm:$0xff] }
   0x2   :  { %v12_v2 = vld [vmem:[%s165_s0] sm:$0xff]  ;;  %v32_v3 = vmul.f32 %v93_v1, %v14_v0  ;;  %v15_v5 = vld [vmem:[%s165_s0 + $0x18] sm:$0xff]  ;;  %v13_v6 = vld [vmem:[%s165_s0 + $0x8] sm:$0xff] }
   0x3   :  { %v30_v7 = vmul.f32 %v92_v4, %v12_v2  ;;  %v33_v8 = vmul.f32 %v93_v1, %v15_v5  ;;  %v31_v9 = vmul.f32 %v92_v4, %v13_v6 }
   0x4   :  { %7 = vsyncpa [#allocation3], 0  ;;  %v41_v10 = vsel %vm34_vm0, %v32_v3, 0.0  ;;  %v51_v14 = vlaneseq  ;;  %vm62_vm1 = vcmask 130112   ;;  %s119_s0 = smov [#allocation2]   ;;  %vm73_vm2 = vcmask 1041409  }
   0x5   :  { %42 = vadd.xlane.f32.xlu1 %v41_v10  ;;  %v35_v11 = vsel %vm34_vm0, %v30_v7, 0.0  ;;  %v44_v12 = vsel %vm34_vm0, %v33_v8, 0.0  ;;  %v38_v13 = vsel %vm34_vm0, %v31_v9, 0.0  ;;  %s84_s1 = sshll.u32 %s119_s0, 4  ;;  %vm76_vm3 = vcmask 123904   ;;  %s85_s1 = int_to_ptr.vmem [resolvable:$true] %s84_s1 }
   0x6   :  { %36 = vadd.xlane.f32.xlu0 %v35_v11  ;;  %v52_v15 = vand.u32 127, %v51_v14  ;;  %v54_v16 = vshrl.u32 %v51_v14, 7  ;;  %s95_s21 = scalar_lea.vmem %s85_s1, 32  ;;  %p100_p1 = scmp.lt.s32.totalorder %s85_s1, %s85_s1 }
   0x7   :  { %p96_p0 = scmp.ne.s32.totalorder %s85_s1, %s95_s21  ;;  %p101_p2 = scmp.lt.s32.totalorder %s95_s21, %s95_s21 }
   0x8   :  { %v57_v17 = vadd.s32 4294967288, %v52_v15  ;;  %v55_v19 = vsub.s32 %v52_v15, %v54_v16 }
   0x9   :  { %45 = vadd.xlane.f32.xlu1 %v44_v12  ;;  %p102_p3 = por %p101_p2, %p100_p1 }
   0xa   :  { %39 = vadd.xlane.f32.xlu0 %v38_v13  ;;  %v60_v21 = vsub.s32 %v57_v17, %v54_v16 }
   0xb   :  { %p103_p4 = pnand %p102_p3, %p96_p0 }
  0x92   :  { %v43_v18 = vpop.xlane.xlu1 %42 }
  0x93   :  { %v37_v20 = vpop.xlane.xlu0 %36  ;;  %v67_v23 = vrot.slane %v43_v18, %v55_v19 }
  0x94   :  { %v56_v26 = vrot.slane %v37_v20, %v55_v19 }
  0x96   :  { %v46_v22 = vpop.xlane.xlu1 %45 }
  0x97   :  { %v71_v24 = vrot.slane %v46_v22, %v60_v21  ;;  %v40_v25 = vpop.xlane.xlu0 %39 }
  0x98   :  { %v61_v27 = vrot.slane %v40_v25, %v60_v21 }
  0x99   :  { %v72_v28 = vsel %vm62_vm1, %v71_v24, %v67_v23 }
  0x9a   :  { %v63_v29 = vsel %vm62_vm1, %v61_v27, %v56_v26 }
  0x9b   :  { %v74_v30 = vsel %vm73_vm2, %v72_v28, %v63_v29 }
  0x9c   :  { %77 = vst.msk [vmem:[#allocation2] sm:$0x3] %vm76_vm3, %v74_v30 }
  0x9d   :  { %106 = shalt.err (!%p103_p4)
}
  0x9e   :  { %s107_s24 = scalar_lea.hbm %s167_s2, 32 }
  0x9f   :  { %p108_p5 = scmp.ne.s32.totalorder %s167_s2, %s107_s24  ;;  %p111_p6 = scmp.lt.u32.totalorder %s107_s24, %s167_s2 }
  0xa1   :  { %p113_p7 = pnand %p111_p6, %p108_p5 }
  0xa3   :  { %116 = shalt.err (!%p113_p7)
}
  0xa4   :  { %87 = dma.vmem_to_hbm [thread:$0]  %s85_s1, 32, %s167_s2, [#allocation3]  }
  0xa5   :  { %117 = dma.done.wait [#allocation3], 32  }
  0xa6   :  { %118 = vsyncadd [#allocation3], 4294967264 }
  0xa7   :  { %91 = vsyncpa [#allocation3], 1 }

</bundles_post_ra>
